<compile_context>
chip_gen: v7x
topology: tpu7x:2x2x1
jax: 0.10.0
libtpu: 0.0.40
codegen_flags: <defaults>
</compile_context>

<pallas_src>
from functools import partial

import jax
import jax.numpy as jnp
from jax.experimental import pallas as pl
from jax.experimental.pallas import tpu as pltpu

LEAKY_SLOPE = 0.01  # PyTorch nn.LeakyReLU default negative_slope
LANE = 128
SUBLANE = 8


def _round_up(n, m):
    return ((n + m - 1) // m) * m


def _cdiv(a, b):
    return (a + b - 1) // b


def _leaky_relu(x):
    return jnp.where(x > 0, x, LEAKY_SLOPE * x)


def qnet_kernel(x_ref, w1_ref, b1_ref, w2_ref, b2_ref, w3_ref, b3_ref, o_ref):
    # One (TM, obs_len) batch tile; padded weights/biases stay VMEM-resident
    # across the whole grid (constant index_map -> fetched once).
    x = x_ref[...].astype(jnp.bfloat16)                               # f32->bf16 on VPU
    h1 = jnp.dot(x, w1_ref[...], preferred_element_type=jnp.float32) + b1_ref[...]
    h1 = _leaky_relu(h1).astype(jnp.bfloat16)                         # (TM, Hp)
    h2 = jnp.dot(h1, w2_ref[...], preferred_element_type=jnp.float32) + b2_ref[...]
    h2 = _leaky_relu(h2).astype(jnp.bfloat16)                         # (TM, Hp)
    h3 = jnp.dot(h2, w3_ref[...], preferred_element_type=jnp.float32) + b3_ref[...]
    o_ref[...] = h3.astype(o_ref.dtype)                               # narrow (TM, actions_n)


def prepare_params(params):
    """Pad + cast the parameters ONCE (per parameter update), outside the hot path.

    Zero-padding of the hidden lanes is exact only because the padded bias
    entries are also zero (LeakyReLU(0) == 0), so padded lanes stay zero
    throughout the network. Keep that invariant if this layout is changed.
    """
    w1, b1, w2, b2, w3, b3 = (params["w1"], params["b1"], params["w2"],
                              params["b2"], params["w3"], params["b3"])
    obs_len, hidden = w1.shape
    actions_n = w3.shape[1]
    h_pad = _round_up(hidden, LANE)  # lane-dense hidden activations

    w1p = jnp.zeros((obs_len, h_pad), jnp.bfloat16).at[:, :hidden].set(
        w1.astype(jnp.bfloat16))
    b1p = jnp.zeros((1, h_pad), jnp.float32).at[:, :hidden].set(b1)
    w2p = jnp.zeros((h_pad, h_pad), jnp.bfloat16).at[:hidden, :hidden].set(
        w2.astype(jnp.bfloat16))
    b2p = jnp.zeros((1, h_pad), jnp.float32).at[:, :hidden].set(b2)
    w3p = jnp.zeros((h_pad, actions_n), jnp.bfloat16).at[:hidden, :].set(
        w3.astype(jnp.bfloat16))
    b3p = b3.astype(jnp.float32)
    return {"w1": w1p, "b1": b1p, "w2": w2p, "b2": b2p, "w3": w3p, "b3": b3p}


def _pick_tiling(batch, tile_m):
    """Pick (tm, n_tiles). Small batch -> one 8-aligned tile.
    Large batch -> even tile count (dual-TC v7x) with minimal row overshoot."""
    if batch <= max(tile_m // 2, SUBLANE):
        return _round_up(max(batch, 1), SUBLANE), 1
    n_tiles = max(2, _cdiv(batch, tile_m))
    if n_tiles % 2:
        n_tiles += 1
    tm = _round_up(_cdiv(batch, n_tiles), SUBLANE)
    return tm, n_tiles


@partial(jax.jit, static_argnames=("tile_m",))
def q_network_forward(x, padded_params, *, tile_m=1024):
    """x: (batch, obs_len) float32. padded_params: output of prepare_params()."""
    w1p, b1p = padded_params["w1"], padded_params["b1"]
    w2p, b2p = padded_params["w2"], padded_params["b2"]
    w3p, b3p = padded_params["w3"], padded_params["b3"]

    batch, obs_len = x.shape
    actions_n = w3p.shape[1]

    tm, n_tiles = _pick_tiling(batch, tile_m)
    batch_pad = tm * n_tiles
    # Only pad the batch axis (rows) when needed; no host-side dtype cast.
    xp = x if batch_pad == batch else jnp.pad(x, ((0, batch_pad - batch), (0, 0)))

    resident = lambda shape: pl.BlockSpec(shape, lambda i: (0, 0))

    out = pl.pallas_call(
        qnet_kernel,
        out_shape=jax.ShapeDtypeStruct((batch_pad, actions_n), jnp.float32),
        grid=(n_tiles,),
        in_specs=[
            pl.BlockSpec((tm, obs_len), lambda i: (i, 0)),   # streamed batch tiles of x
            resident(w1p.shape), resident(b1p.shape),        # weights/biases stay put
            resident(w2p.shape), resident(b2p.shape),
            resident(w3p.shape), resident(b3p.shape),
        ],
        out_specs=pl.BlockSpec((tm, actions_n), lambda i: (i, 0)),  # narrow, masked vst
        compiler_params=pltpu.CompilerParams(
            dimension_semantics=("parallel",),   # shard batch tiles across TCs on v7x
            vmem_limit_bytes=16 << 20,           # generous headroom, fits v7x's 64 MiB
        ),
    )(xp, w1p, b1p, w2p, b2p, w3p, b3p)

    return out if batch_pad == batch else out[:batch]


def init_params(key, obs_len, hidden_size, actions_n):
    """Deterministic init mimicking PyTorch Linear default U(-1/sqrt(fan_in), 1/sqrt(fan_in))."""
    ks = jax.random.split(key, 6)

    def lin(kw, kb, fan_in, fan_out):
        bound = 1.0 / jnp.sqrt(jnp.float32(fan_in))
        w = jax.random.uniform(kw, (fan_in, fan_out), jnp.float32, -bound, bound)
        b = jax.random.uniform(kb, (1, fan_out), jnp.float32, -bound, bound)
        return w, b

    w1, b1 = lin(ks[0], ks[1], obs_len, hidden_size)
    w2, b2 = lin(ks[2], ks[3], hidden_size, hidden_size)
    w3, b3 = lin(ks[4], ks[5], hidden_size, actions_n)
    return {"w1": w1, "b1": b1, "w2": w2, "b2": b2, "w3": w3, "b3": b3}


def q_network_ref(x, params):
    """Pure-JAX f32 reference for correctness check."""
    h = _leaky_relu(x @ params["w1"] + params["b1"])
    h = _leaky_relu(h @ params["w2"] + params["b2"])
    return h @ params["w3"] + params["b3"]


if __name__ == "__main__":
    obs_len, hidden_size, actions_n = 16, 32, 3

    key = jax.random.PRNGKey(0)
    kx, kp, kx2 = jax.random.split(key, 3)
    params = init_params(kp, obs_len, hidden_size, actions_n)

    # Pad/cast the parameters once (hoisted out of the per-call hot path).
    padded_params = prepare_params(params)
    padded_params = jax.block_until_ready(padded_params)

    # Small-batch check (matches the original DQN usage: single tile, grid=(1,)).
    batch = 8
    x = jax.random.normal(kx, (batch, obs_len), jnp.float32)
    out = jax.block_until_ready(q_network_forward(x, padded_params))
    ref = q_network_ref(x, params)
    assert out.shape == (batch, actions_n)
    # bf16 MXU operands -> looser tolerance than pure-f32.
    assert jnp.allclose(out, ref, atol=5e-2, rtol=5e-2), "mismatch vs reference (batch=8)"

    # Larger batch check: exercises the multi-tile pipelined path (even grid).
    batch2 = 1024
    x2 = jax.random.normal(kx2, (batch2, obs_len), jnp.float32)
    out2 = jax.block_until_ready(q_network_forward(x2, padded_params))
    ref2 = q_network_ref(x2, params)
    assert out2.shape == (batch2, actions_n)
    assert jnp.allclose(out2, ref2, atol=5e-2, rtol=5e-2), "mismatch vs reference (batch=1024)"

    print("KERNEL_OK")
</pallas_src>

<mosaic_0001>
module attributes {stable_mosaic.version = 11 : i64} {
  func.func @qnet_kernel(%arg0: i32, %arg1: memref<8x16xf32, #tpu.memory_space<vmem>>, %arg2: memref<16x128xbf16, #tpu.memory_space<vmem>>, %arg3: memref<1x128xf32, #tpu.memory_space<vmem>>, %arg4: memref<128x128xbf16, #tpu.memory_space<vmem>>, %arg5: memref<1x128xf32, #tpu.memory_space<vmem>>, %arg6: memref<128x3xbf16, #tpu.memory_space<vmem>>, %arg7: memref<1x3xf32, #tpu.memory_space<vmem>>, %arg8: memref<8x3xf32, #tpu.memory_space<vmem>>) attributes {dimension_semantics = [#tpu.dimension_semantics<parallel>], iteration_bounds = array<i64: 1>, scalar_prefetch = 0 : i64, scratch_operands = 0 : i64, tpu.core_type = #tpu.core_type<tc>, window_params = [{transform_indices = @transform_0, window_bounds = array<i64: 8, 16>}, {pipeline_mode = #tpu.pipeline_mode<synchronous>, transform_indices = @transform_1, window_bounds = array<i64: 16, 128>}, {pipeline_mode = #tpu.pipeline_mode<synchronous>, transform_indices = @transform_2, window_bounds = array<i64: 1, 128>}, {pipeline_mode = #tpu.pipeline_mode<synchronous>, transform_indices = @transform_3, window_bounds = array<i64: 128, 128>}, {pipeline_mode = #tpu.pipeline_mode<synchronous>, transform_indices = @transform_4, window_bounds = array<i64: 1, 128>}, {pipeline_mode = #tpu.pipeline_mode<synchronous>, transform_indices = @transform_5, window_bounds = array<i64: 128, 3>}, {pipeline_mode = #tpu.pipeline_mode<synchronous>, transform_indices = @transform_6, window_bounds = array<i64: 1, 3>}, {transform_indices = @transform_7, window_bounds = array<i64: 8, 3>}]} {
    %c0 = arith.constant 0 : index
    %c0_0 = arith.constant 0 : index
    %0 = vector.load %arg1[%c0, %c0_0] : memref<8x16xf32, #tpu.memory_space<vmem>>, vector<8x16xf32>
    %1 = arith.truncf %0 : vector<8x16xf32> to vector<8x16xbf16>
    %c0_1 = arith.constant 0 : index
    %c0_2 = arith.constant 0 : index
    %2 = vector.load %arg2[%c0_1, %c0_2] : memref<16x128xbf16, #tpu.memory_space<vmem>>, vector<16x128xbf16>
    %cst = arith.constant dense<0.000000e+00> : vector<8x128xf32>
    %3 = tpu.matmul %1, %2, %cst {dimension_numbers = #tpu.dot_dimension_numbers<[1], [0], [0], [1], [0, 0, 1, 1], [], []>} : vector<8x16xbf16>, vector<16x128xbf16>, vector<8x128xf32> -> vector<8x128xf32>
    %c0_3 = arith.constant 0 : index
    %c0_4 = arith.constant 0 : index
    %4 = vector.load %arg3[%c0_3, %c0_4] : memref<1x128xf32, #tpu.memory_space<vmem>>, vector<1x128xf32>
    %5 = vector.broadcast %4 : vector<1x128xf32> to vector<8x128xf32>
    %6 = arith.addf %3, %5 : vector<8x128xf32>
    %cst_5 = arith.constant 0.000000e+00 : f32
    %7 = vector.broadcast %cst_5 : f32 to vector<8x128xf32>
    %8 = arith.cmpf ogt, %6, %7 : vector<8x128xf32>
    %cst_6 = arith.constant 0.00999999977 : f32
    %9 = vector.broadcast %cst_6 : f32 to vector<8x128xf32>
    %10 = arith.mulf %9, %6 : vector<8x128xf32>
    %11 = arith.select %8, %6, %10 : vector<8x128xi1>, vector<8x128xf32>
    %12 = arith.truncf %11 : vector<8x128xf32> to vector<8x128xbf16>
    %c0_7 = arith.constant 0 : index
    %c0_8 = arith.constant 0 : index
    %13 = vector.load %arg4[%c0_7, %c0_8] : memref<128x128xbf16, #tpu.memory_space<vmem>>, vector<128x128xbf16>
    %cst_9 = arith.constant dense<0.000000e+00> : vector<8x128xf32>
    %14 = tpu.matmul %12, %13, %cst_9 {dimension_numbers = #tpu.dot_dimension_numbers<[1], [0], [0], [1], [0, 0, 1, 1], [], []>} : vector<8x128xbf16>, vector<128x128xbf16>, vector<8x128xf32> -> vector<8x128xf32>
    %c0_10 = arith.constant 0 : index
    %c0_11 = arith.constant 0 : index
    %15 = vector.load %arg5[%c0_10, %c0_11] : memref<1x128xf32, #tpu.memory_space<vmem>>, vector<1x128xf32>
    %16 = vector.broadcast %15 : vector<1x128xf32> to vector<8x128xf32>
    %17 = arith.addf %14, %16 : vector<8x128xf32>
    %cst_12 = arith.constant 0.000000e+00 : f32
    %18 = vector.broadcast %cst_12 : f32 to vector<8x128xf32>
    %19 = arith.cmpf ogt, %17, %18 : vector<8x128xf32>
    %cst_13 = arith.constant 0.00999999977 : f32
    %20 = vector.broadcast %cst_13 : f32 to vector<8x128xf32>
    %21 = arith.mulf %20, %17 : vector<8x128xf32>
    %22 = arith.select %19, %17, %21 : vector<8x128xi1>, vector<8x128xf32>
    %23 = arith.truncf %22 : vector<8x128xf32> to vector<8x128xbf16>
    %c0_14 = arith.constant 0 : index
    %c0_15 = arith.constant 0 : index
    %24 = vector.load %arg6[%c0_14, %c0_15] : memref<128x3xbf16, #tpu.memory_space<vmem>>, vector<128x3xbf16>
    %cst_16 = arith.constant dense<0.000000e+00> : vector<8x3xf32>
    %25 = tpu.matmul %23, %24, %cst_16 {dimension_numbers = #tpu.dot_dimension_numbers<[1], [0], [0], [1], [0, 0, 1, 1], [], []>} : vector<8x128xbf16>, vector<128x3xbf16>, vector<8x3xf32> -> vector<8x3xf32>
    %c0_17 = arith.constant 0 : index
    %c0_18 = arith.constant 0 : index
    %26 = vector.load %arg7[%c0_17, %c0_18] : memref<1x3xf32, #tpu.memory_space<vmem>>, vector<1x3xf32>
    %27 = vector.broadcast %26 : vector<1x3xf32> to vector<8x3xf32>
    %28 = arith.addf %25, %27 : vector<8x3xf32>
    %c0_19 = arith.constant 0 : index
    %c0_20 = arith.constant 0 : index
    %29 = vector.load %arg8[%c0_19, %c0_20] : memref<8x3xf32, #tpu.memory_space<vmem>>, vector<8x3xf32>
    tpu.vector_store %arg8[%c0_19, %c0_20], %28 {strides = array<i32>} : memref<8x3xf32, #tpu.memory_space<vmem>>, vector<8x3xf32>,
    return
  }
  func.func @transform_0(%arg0: i32) -> (i32, i32) {
    %c0_i32 = arith.constant 0 : i32
    %c0_i32_0 = arith.constant 0 : i32
    return %arg0, %c0_i32 : i32, i32
  }
  func.func @transform_1(%arg0: i32) -> (i32, i32) {
    %c0_i32 = arith.constant 0 : i32
    %c0_i32_0 = arith.constant 0 : i32
    %c0_i32_1 = arith.constant 0 : i32
    return %c0_i32, %c0_i32_0 : i32, i32
  }
  func.func @transform_2(%arg0: i32) -> (i32, i32) {
    %c0_i32 = arith.constant 0 : i32
    %c0_i32_0 = arith.constant 0 : i32
    %c0_i32_1 = arith.constant 0 : i32
    return %c0_i32, %c0_i32_0 : i32, i32
  }
  func.func @transform_3(%arg0: i32) -> (i32, i32) {
    %c0_i32 = arith.constant 0 : i32
    %c0_i32_0 = arith.constant 0 : i32
    %c0_i32_1 = arith.constant 0 : i32
    return %c0_i32, %c0_i32_0 : i32, i32
  }
  func.func @transform_4(%arg0: i32) -> (i32, i32) {
    %c0_i32 = arith.constant 0 : i32
    %c0_i32_0 = arith.constant 0 : i32
    %c0_i32_1 = arith.constant 0 : i32
    return %c0_i32, %c0_i32_0 : i32, i32
  }
  func.func @transform_5(%arg0: i32) -> (i32, i32) {
    %c0_i32 = arith.constant 0 : i32
    %c0_i32_0 = arith.constant 0 : i32
    %c0_i32_1 = arith.constant 0 : i32
    return %c0_i32, %c0_i32_0 : i32, i32
  }
  func.func @transform_6(%arg0: i32) -> (i32, i32) {
    %c0_i32 = arith.constant 0 : i32
    %c0_i32_0 = arith.constant 0 : i32
    %c0_i32_1 = arith.constant 0 : i32
    return %c0_i32, %c0_i32_0 : i32, i32
  }
  func.func @transform_7(%arg0: i32) -> (i32, i32) {
    %c0_i32 = arith.constant 0 : i32
    %c0_i32_0 = arith.constant 0 : i32
    return %arg0, %c0_i32 : i32, i32
  }
}

</mosaic_0001>

<bundles_post_ra>
// kernel: q_network_forward.1
= control target key start
LH: loop header
LB: loop body
LE: loop exit
PB: predicated region body
PF: predicated region fallthrough
CT: control target
= control target key end

     0   :  { %v430_v0 = vmov 0.0   ;;  %vm431_vm0 = vmmov 0   ;;  %vm44_vm1 = vcmask 130048   ;;  %vm318_vm4 = vcmask 23552   ;;  %s558_s1 = inlined_call_operand.vmem [shape: bf16[16,128], index: 1, kind: input, shape index: {}]   ;;  %s559_s0 = inlined_call_operand.vmem [shape: f32[8,16], index: 0, kind: input, shape index: {}]   ;;  %s560_s3 = inlined_call_operand.vmem [shape: bf16[128,128], index: 3, kind: input, shape index: {}]   ;;  %s561_s5 = inlined_call_operand.vmem [shape: bf16[128,3], index: 5, kind: input, shape index: {}]   ;;  %s562_s2 = inlined_call_operand.vmem [shape: f32[1,128], index: 2, kind: input, shape index: {}]   ;;  %s563_s4 = inlined_call_operand.vmem [shape: f32[1,128], index: 4, kind: input, shape index: {}]   ;;  %s564_s6 = inlined_call_operand.vmem [shape: f32[1,3], index: 6, kind: input, shape index: {}]   ;;  %s565_s7 = inlined_call_operand.vmem [shape: f32[8,3], index: 7, kind: output, shape index: {}]  }
   0x1   :  { %365 = vmatprep.subr.bf16.mxu0 %v430_v0  ;;  %v413_v1 = vld [vmem:[%s558_s1] sm:$0xff]   ;;  %367 = vmatprep.mubr.msk.bf16.mxu0 %vm431_vm0, %v430_v0  ;;  %v415_v5 = vld [vmem:[%s560_s3 + $0x8] sm:$0xff]   ;;  %v416_v6 = vld [vmem:[%s560_s3 + $0x10] sm:$0xff]  }
   0x2   :  { %v27_v2 = vld [vmem:[%s559_s0] sm:$0xff]  ;;  %371 = vmatprep.subr.bf16.mxu1 %v430_v0  ;;  %387 = vmatprep.mubr.msk.bf16.mxu1 %vm431_vm0, %v430_v0  ;;  %v417_v7 = vld [vmem:[%s560_s3 + $0x18] sm:$0xff]   ;;  %v419_v9 = vld [vmem:[%s560_s3 + $0x28] sm:$0xff]  }
   0x3   :  { %366 = vmatpush3.bf16.msra.mxu0 %v413_v1  ;;  %v28_v3 = vpack.c.bf16 %v27_v2, %v27_v2  ;;  %v414_v4 = vld [vmem:[%s560_s3] sm:$0xff]   ;;  %v420_v10 = vld [vmem:[%s560_s3 + $0x30] sm:$0xff]   ;;  %v421_v11 = vld [vmem:[%s560_s3 + $0x38] sm:$0xff]  }
   0x4   :  { %391 = vmatprep.subr.bf16.mxu0 %v430_v0  ;;  %372 = vmatpush3.bf16.msra.mxu1 %v414_v4  ;;  %v418_v8 = vld [vmem:[%s560_s3 + $0x20] sm:$0xff]   ;;  %v423_v13 = vld [vmem:[%s561_s5 + $0x8] sm:$0xff]   ;;  %v424_v14 = vld [vmem:[%s561_s5 + $0x10] sm:$0xff]  }
   0x5   :  { %373 = vmatprep.subr.bf16.mxu1 %v430_v0  ;;  %v422_v12 = vld [vmem:[%s561_s5] sm:$0xff]   ;;  %v425_v15 = vld [vmem:[%s561_s5 + $0x18] sm:$0xff]   ;;  %v427_v17 = vld [vmem:[%s561_s5 + $0x28] sm:$0xff]  }
   0x6   :  { %368 = vmatmul.mubr.msk.bf16.vlgmr.msra.gmra.mrb[0].mxu0 %vm44_vm1, %v28_v3  ;;  %v426_v16 = vld [vmem:[%s561_s5 + $0x20] sm:$0xff]   ;;  %v428_v27 = vld [vmem:[%s561_s5 + $0x30] sm:$0xff]   ;;  %v429_v28 = vld [vmem:[%s561_s5 + $0x38] sm:$0xff]  }
   0x7   :  { %407 = vmatprep.mubr.msk.bf16.mxu0 %vm431_vm0, %v430_v0  ;;  %392 = vmatpush3.bf16.msra.mxu0 %v422_v12  ;;  %v324_v18 = vld [vmem:[%s562_s2] ss:$0 sm:$0xff] }
   0x8   :  { %374 = vmatpush3.bf16.msra.mxu1 %v415_v5  ;;  %393 = vmatprep.subr.bf16.mxu0 %v430_v0  ;;  %v327_v29 = vld [vmem:[%s563_s4] ss:$0 sm:$0xff] }
   0x9   :  { %375 = vmatprep.subr.bf16.mxu1 %v430_v0  ;;  %v336_v38 = vld [vmem:[%s564_s6] ss:$0 sm:$0xff] }
   0xb   :  { %394 = vmatpush3.bf16.msra.mxu0 %v423_v13 }
   0xc   :  { %376 = vmatpush3.bf16.msra.mxu1 %v416_v6  ;;  %395 = vmatprep.subr.bf16.mxu0 %v430_v0 }
   0xd   :  { %377 = vmatprep.subr.bf16.mxu1 %v430_v0 }
   0xf   :  { %396 = vmatpush3.bf16.msra.mxu0 %v424_v14 }
  0x10   :  { %378 = vmatpush3.bf16.msra.mxu1 %v417_v7  ;;  %397 = vmatprep.subr.bf16.mxu0 %v430_v0 }
  0x11   :  { %379 = vmatprep.subr.bf16.mxu1 %v430_v0 }
  0x13   :  { %398 = vmatpush3.bf16.msra.mxu0 %v425_v15 }
  0x14   :  { %380 = vmatpush3.bf16.msra.mxu1 %v418_v8  ;;  %399 = vmatprep.subr.bf16.mxu0 %v430_v0 }
  0x15   :  { %381 = vmatprep.subr.bf16.mxu1 %v430_v0 }
  0x17   :  { %400 = vmatpush3.bf16.msra.mxu0 %v426_v16 }
  0x18   :  { %382 = vmatpush3.bf16.msra.mxu1 %v419_v9  ;;  %401 = vmatprep.subr.bf16.mxu0 %v430_v0 }
  0x19   :  { %383 = vmatprep.subr.bf16.mxu1 %v430_v0 }
  0x1b   :  { %402 = vmatpush3.bf16.msra.mxu0 %v427_v17 }
  0x1c   :  { %384 = vmatpush3.bf16.msra.mxu1 %v420_v10  ;;  %403 = vmatprep.subr.bf16.mxu0 %v430_v0 }
  0x1d   :  { %385 = vmatprep.subr.bf16.mxu1 %v430_v0 }
  0x1f   :  { %404 = vmatpush3.bf16.msra.mxu0 %v428_v27 }
  0x20   :  { %386 = vmatpush3.bf16.msra.mxu1 %v421_v11  ;;  %405 = vmatprep.subr.bf16.mxu0 %v430_v0 }
  0x23   :  { %406 = vmatpush3.bf16.msra.mxu0 %v429_v28 }
  0xd9   :  { %v82_v19 = vpop.f32.mrb[0].mxu0 }
  0xda   :  { %v83_v20 = vadd.f32 %v324_v18, %v82_v19  ;;  %v369_v21 = vpop.f32.mrb[1].mxu0 }
  0xdb   :  { %v85_v22 = vpop.f32.mrb[2].mxu0 }
  0xdc   :  { %vm88_vm2 = vcmp.gt.f32.partialorder %v83_v20, 0.0  ;;  %v89_v23 = vmul.f32 0.01, %v83_v20  ;;  %v370_v24 = vpop.f32.mrb[3].mxu0 }
  0xde   :  { %v90_v25 = vsel %vm88_vm2, %v83_v20, %v89_v23 }
  0xdf   :  { %v91_v26 = vpack.c.bf16 %v90_v25, %v90_v25 }
  0xe1   :  { %388 = vmatmul.mubr.bf16.vlgmr.msra.gmra.mrb[0].mxu1 %v91_v26 }
 0x1b4   :  { %v197_v30 = vpop.f32.mrb[0].mxu1 }
 0x1b5   :  { %v198_v31 = vadd.f32 %v327_v29, %v197_v30  ;;  %v389_v32 = vpop.f32.mrb[1].mxu1 }
 0x1b6   :  { %v200_v33 = vpop.f32.mrb[2].mxu1 }
 0x1b7   :  { %vm203_vm3 = vcmp.gt.f32.partialorder %v198_v31, 0.0  ;;  %v204_v34 = vmul.f32 0.01, %v198_v31  ;;  %v390_v35 = vpop.f32.mrb[3].mxu1 }
 0x1b9   :  { %v205_v36 = vsel %vm203_vm3, %v198_v31, %v204_v34 }
 0x1ba   :  { %v206_v37 = vpack.c.bf16 %v205_v36, %v205_v36 }
 0x1bc   :  { %408 = vmatmul.mubr.bf16.vlgmr.msra.gmra.mrb[4].mxu0 %v206_v37 }
 0x28f   :  { %v312_v39 = vpop.f32.mrb[4].mxu0 }
 0x290   :  { %v313_v40 = vadd.f32 %v336_v38, %v312_v39  ;;  %v409_v41 = vpop.f32.mrb[5].mxu0 }
 0x291   :  { %v315_v42 = vpop.f32.mrb[6].mxu0 }
 0x292   :  { %319 = vst.msk [vmem:[%s565_s7] sm:$0xff] %vm318_vm4, %v313_v40  ;;  %v410_v43 = vpop.f32.mrb[7].mxu0 }

</bundles_post_ra>
